<compile_context>
chip_gen: v5e
topology: v5e:2x2
jax: 0.10.0
libtpu: 0.0.40
codegen_flags: <defaults>
</compile_context>

<pallas_src>
import functools
import math

import jax
import jax.numpy as jnp
from jax.experimental import pallas as pl
from jax.experimental.pallas import tpu as pltpu


_NEG_BIG = -1e30  # bias for padded vocab columns -> exp() underflows to 0 in the softmax


def _round_up(x, m):
    return (x + m - 1) // m * m


def _vmem_budget_bytes():
    """~75% of per-core VMEM (96 MiB on v5e/v6e, 48 MiB on v7x); 48 MiB if unknown."""
    cap = 64 * 1024 * 1024  # v7x per-TC physical size -> safe default on every generation
    try:
        info = pltpu.get_tpu_info()
        cap = int(getattr(info, "vmem_capacity_bytes", cap)) or cap
    except Exception:
        pass
    return min(cap * 3 // 4, 100 * 1024 * 1024)


def _shrink_to_fit(t, fits):
    while t > 16 and not fits(t):
        t = max(16, _round_up(t // 2, 16))
    return t


# --------------------------- fused single-pass kernel ---------------------------
def _fused_logsoftmax_kernel(x_ref, w_ref, b_ref, o_ref, m_sc, l_sc):
    # x_ref: (tm, D) bf16; w_ref: (D, tv) bf16; b_ref: (1, tv) f32
    # o_ref: (tm, Vp) f32 (resident across the vocab axis); m_sc/l_sc: (tm, 1) f32
    j = pl.program_id(1)
    tv = w_ref.shape[1]

    @pl.when(j == 0)
    def _():
        m_sc[...] = jnp.full(m_sc.shape, -jnp.inf, dtype=m_sc.dtype)
        l_sc[...] = jnp.zeros(l_sc.shape, dtype=l_sc.dtype)

    logits = jnp.dot(x_ref[...], w_ref[...], preferred_element_type=jnp.float32)
    logits = logits + b_ref[...]  # (1, tv) broadcasts over rows, f32

    # Stash this vocab tile's raw logits into the resident output strip (lane-aligned).
    col = pl.multiple_of(j * tv, 128)
    o_ref[:, pl.ds(col, tv)] = logits

    # Online (running) log-sum-exp across vocab tiles.
    m_prev = m_sc[...]
    m_new = jnp.maximum(m_prev, jnp.max(logits, axis=-1, keepdims=True))
    l_sc[...] = jnp.exp(m_prev - m_new) * l_sc[...] + jnp.sum(
        jnp.exp(logits - m_new), axis=-1, keepdims=True)
    m_sc[...] = m_new

    @pl.when(j == pl.num_programs(1) - 1)
    def _():
        lse = m_sc[...] + jnp.log(l_sc[...])
        o_ref[...] = o_ref[...] - lse  # finalize: log-probs, still in VMEM


# --------------------------- two-pass fallback kernels ---------------------------
def _logits_lse_kernel(x_ref, w_ref, b_ref, logits_ref, lse_ref, m_sc, l_sc):
    j = pl.program_id(1)

    @pl.when(j == 0)
    def _():
        m_sc[...] = jnp.full(m_sc.shape, -jnp.inf, dtype=m_sc.dtype)
        l_sc[...] = jnp.zeros(l_sc.shape, dtype=l_sc.dtype)

    logits = jnp.dot(x_ref[...], w_ref[...], preferred_element_type=jnp.float32)
    logits = logits + b_ref[...]
    logits_ref[...] = logits.astype(logits_ref.dtype)

    m_prev = m_sc[...]
    m_new = jnp.maximum(m_prev, jnp.max(logits, axis=-1, keepdims=True))
    l_sc[...] = jnp.exp(m_prev - m_new) * l_sc[...] + jnp.sum(
        jnp.exp(logits - m_new), axis=-1, keepdims=True)
    m_sc[...] = m_new

    @pl.when(j == pl.num_programs(1) - 1)
    def _():
        lse_ref[...] = m_sc[...] + jnp.log(l_sc[...])


def _subtract_lse_kernel(logits_ref, lse_ref, o_ref):
    o_ref[...] = (logits_ref[...].astype(jnp.float32) - lse_ref[...]).astype(o_ref.dtype)


# --------------------------- host-side wrappers ---------------------------
def prepare_projection_params(w_t, b, *, tv=512, compute_dtype=jnp.bfloat16):
    """One-time weight prep (hoisted out of the per-call path).

    w_t: (d_model, vocab) = torch Linear weight transposed; b: (vocab,).
    Returns (w_packed (D, Vp) compute_dtype, b_packed (1, Vp) f32, vocab_size, tv).
    Padded vocab columns get zero weights and a -1e30 bias so they never affect the softmax.
    """
    D, V = w_t.shape
    tv = max(128, min(_round_up(tv, 128), _round_up(V, 128)))
    Vp = _round_up(V, tv)
    wc = w_t.astype(compute_dtype)
    bc = b.astype(jnp.float32)
    if Vp != V:
        wc = jnp.pad(wc, ((0, 0), (0, Vp - V)))
        bc = jnp.pad(bc, (0, Vp - V), constant_values=_NEG_BIG)
    return wc, bc.reshape(1, Vp), V, tv


def projection_layer(x, w_packed, b_packed, *, vocab_size, tv, tm=1024, fused=None):
    """log_softmax(x @ W^T + b, axis=-1) -> (B, S, vocab_size) float32."""
    B, S, D = x.shape
    Dw, Vp = w_packed.shape
    assert Dw == D and Vp % tv == 0 and Vp >= vocab_size
    M = B * S
    V = vocab_size

    budget = _vmem_budget_bytes()
    cdt = w_packed.dtype
    isz = jnp.dtype(cdt).itemsize

    # Row-tile selection: as large as possible (the (D, tv) weight tiles are re-streamed
    # from HBM once per row tile), but keep >= 2 row tiles when M allows so the "parallel"
    # rows axis can be sharded across v7x's two TensorCores.
    tm_cap = _round_up(M, 16)
    if M >= 32:
        tm_cap = min(tm_cap, _round_up((M + 1) // 2, 16))
    tm_req = max(16, min(_round_up(tm, 16), tm_cap))

    def fused_bytes(t):
        return (2 * t * D * isz        # x tile (double-buffered)
                + 2 * D * tv * isz     # streamed weight tile
                + 2 * tv * 4           # bias tile
                + 2 * t * Vp * 4       # resident (t, Vp) f32 log-prob strip
                + 4 * t * 4)           # m/l scratch

    def pass1_bytes(t):
        return (2 * t * D * isz + 2 * D * tv * isz + 2 * tv * 4
                + 2 * t * tv * 4 + 2 * t * 4 + 4 * t * 4)

    if fused is None:
        t_f = _shrink_to_fit(tm_req, lambda t: fused_bytes(t) <= budget)
        # Fuse only when it does not force the row tile below 128 (tiny row tiles re-stream
        # the weight matrix too many times); always fuse if the whole problem is that small.
        fused = fused_bytes(t_f) <= budget and t_f >= min(128, tm_req)
    if fused:
        tm = _shrink_to_fit(tm_req, lambda t: fused_bytes(t) <= budget)
    else:
        tm = _shrink_to_fit(tm_req, lambda t: pass1_bytes(t) <= budget)

    Mp = _round_up(M, tm)

    # Per-call activation pad/cast (cheap; weights were prepared once).
    x2 = x.reshape(M, D)
    if Mp != M:
        x2 = jnp.pad(x2, ((0, Mp - M), (0, 0)))
    xc = x2.astype(cdt)

    grid = (Mp // tm, Vp // tv)

    if fused:
        out = pl.pallas_call(
            _fused_logsoftmax_kernel,
            out_shape=jax.ShapeDtypeStruct((Mp, Vp), jnp.float32),
            grid_spec=pltpu.PrefetchScalarGridSpec(
                num_scalar_prefetch=0,
                grid=grid,
                in_specs=[
                    pl.BlockSpec((tm, D), lambda i, j: (i, 0)),   # activation row tile
                    pl.BlockSpec((D, tv), lambda i, j: (0, j)),   # streamed weight tile
                    pl.BlockSpec((1, tv), lambda i, j: (0, j)),   # bias tile
                ],
                out_specs=pl.BlockSpec((tm, Vp), lambda i, j: (i, 0)),  # resident strip
                scratch_shapes=[pltpu.VMEM((tm, 1), jnp.float32),   # running max
                                pltpu.VMEM((tm, 1), jnp.float32)],  # running sum-exp
            ),
            compiler_params=pltpu.CompilerParams(
                dimension_semantics=("parallel", "arbitrary"),
                vmem_limit_bytes=budget,
            ),
            cost_estimate=pl.CostEstimate(
                flops=2 * Mp * D * Vp,
                transcendentals=Mp * Vp + Mp,
                bytes_accessed=(Mp * D * isz + (Mp // tm) * D * Vp * isz
                                + Vp * 4 + Mp * Vp * 4),
            ),
        )(xc, w_packed, b_packed)
        return out[:M, :V].reshape(B, S, V)

    # -------- two-pass fallback (vocab strip too large for VMEM residency) --------
    logits_dtype = jnp.float32  # TODO(synk): bf16 on v5e to halve the dominant logits stream
    logits, lse = pl.pallas_call(
        _logits_lse_kernel,
        out_shape=(jax.ShapeDtypeStruct((Mp, Vp), logits_dtype),
                   jax.ShapeDtypeStruct((Mp, 1), jnp.float32)),
        grid_spec=pltpu.PrefetchScalarGridSpec(
            num_scalar_prefetch=0,
            grid=grid,
            in_specs=[
                pl.BlockSpec((tm, D), lambda i, j: (i, 0)),
                pl.BlockSpec((D, tv), lambda i, j: (0, j)),
                pl.BlockSpec((1, tv), lambda i, j: (0, j)),
            ],
            out_specs=[
                pl.BlockSpec((tm, tv), lambda i, j: (i, j)),   # raw logits tile
                pl.BlockSpec((tm, 1), lambda i, j: (i, 0)),    # lse (carried over j)
            ],
            scratch_shapes=[pltpu.VMEM((tm, 1), jnp.float32),
                            pltpu.VMEM((tm, 1), jnp.float32)],
        ),
        compiler_params=pltpu.CompilerParams(
            dimension_semantics=("parallel", "arbitrary"),
            vmem_limit_bytes=budget,
        ),
        cost_estimate=pl.CostEstimate(
            flops=2 * Mp * D * Vp,
            transcendentals=Mp * Vp + Mp,
            bytes_accessed=(Mp * D * isz + (Mp // tm) * D * Vp * isz + Vp * 4
                            + Mp * Vp * jnp.dtype(logits_dtype).itemsize + Mp * 4),
        ),
    )(xc, w_packed, b_packed)

    # Pass 2 is pure HBM bandwidth: use large, decoupled tiles (multi-MiB blocks).
    tm2, tv2 = tm, tv

    def p2_bytes(a, c):
        return 4 * a * c * 4 + 4 * a * 4   # 2x in + 2x out f32 tiles + lse

    while Mp % (tm2 * 2) == 0 and tm2 * 2 <= 1024 and p2_bytes(tm2 * 2, tv2) <= budget:
        tm2 *= 2
    while Vp % (tv2 * 2) == 0 and p2_bytes(tm2, tv2 * 2) <= budget:
        tv2 *= 2

    out = pl.pallas_call(
        _subtract_lse_kernel,
        out_shape=jax.ShapeDtypeStruct((Mp, Vp), jnp.float32),
        grid_spec=pltpu.PrefetchScalarGridSpec(
            num_scalar_prefetch=0,
            grid=(Mp // tm2, Vp // tv2),
            in_specs=[
                pl.BlockSpec((tm2, tv2), lambda i, j: (i, j)),
                pl.BlockSpec((tm2, 1), lambda i, j: (i, 0)),
            ],
            out_specs=pl.BlockSpec((tm2, tv2), lambda i, j: (i, j)),
        ),
        compiler_params=pltpu.CompilerParams(
            dimension_semantics=("parallel", "parallel"),
            vmem_limit_bytes=budget,
        ),
        cost_estimate=pl.CostEstimate(
            flops=Mp * Vp, transcendentals=0,
            bytes_accessed=2 * Mp * Vp * 4 + Mp * 4,
        ),
        input_output_aliases=({0: 0} if logits_dtype == jnp.float32 else {}),
    )(logits, lse)

    return out[:M, :V].reshape(B, S, V)


def _init_params(key, d_model, vocab_size):
    # Mirrors nn.Linear default init: U(-1/sqrt(d_model), 1/sqrt(d_model)).
    kw, kb = jax.random.split(key)
    bound = 1.0 / math.sqrt(d_model)
    w = jax.random.uniform(kw, (vocab_size, d_model), jnp.float32, -bound, bound)
    b = jax.random.uniform(kb, (vocab_size,), jnp.float32, -bound, bound)
    return w.T, b  # stored as (d_model, vocab) for x @ W^T


if __name__ == "__main__":
    key = jax.random.PRNGKey(0)
    kx, kp = jax.random.split(key)

    # Small shapes: vocab=300 with tv=128 exercises vocab tiling/padding; seq=24 gives
    # M=48 rows -> row tile capped to 32 (>=2 row tiles) plus 16 padded rows.
    batch, seq, d_model, vocab_size = 2, 24, 32, 300
    x = jax.random.normal(kx, (batch, seq, d_model), jnp.float32)
    w_t, b = _init_params(kp, d_model, vocab_size)

    # One-time (hoisted) weight/bias preparation.
    wc, b2, V, tv = prepare_projection_params(w_t, b, tv=128)

    # Reference: same bf16 matmul precision as the kernel, f32 softmax.
    xr = x.reshape(batch * seq, d_model).astype(jnp.bfloat16)
    logits_ref = jnp.dot(xr, w_t.astype(jnp.bfloat16),
                         preferred_element_type=jnp.float32) + b
    ref = jax.nn.log_softmax(logits_ref, axis=-1).reshape(batch, seq, vocab_size)

    for fused in (True, False):  # exercise both the fused and the two-pass fallback paths
        proj_fn = jax.jit(functools.partial(
            projection_layer, vocab_size=V, tv=tv, tm=1024, fused=fused))
        out = jax.block_until_ready(proj_fn(x, wc, b2))
        assert out.shape == (batch, seq, vocab_size), out.shape
        assert out.dtype == jnp.float32
        assert bool(jnp.allclose(out, ref, atol=5e-4, rtol=5e-4)), f"mismatch fused={fused}"

    print("KERNEL_OK")
</pallas_src>

<mosaic_0001>
module attributes {stable_mosaic.version = 11 : i64} {
  func.func @_fused_logsoftmax_kernel(%arg0: i32, %arg1: i32, %arg2: memref<32x32xbf16, #tpu.memory_space<vmem>>, %arg3: memref<32x128xbf16, #tpu.memory_space<vmem>>, %arg4: memref<1x128xf32, #tpu.memory_space<vmem>>, %arg5: memref<32x384xf32, #tpu.memory_space<vmem>>, %arg6: memref<32x1xf32, #tpu.memory_space<vmem>>, %arg7: memref<32x1xf32, #tpu.memory_space<vmem>>) attributes {dimension_semantics = [#tpu.dimension_semantics<parallel>, #tpu.dimension_semantics<arbitrary>], iteration_bounds = array<i64: 2, 3>, scalar_prefetch = 0 : i64, scratch_operands = 2 : i64, tpu.core_type = #tpu.core_type<tc>, window_params = [{transform_indices = @transform_0, window_bounds = array<i64: 32, 32>}, {transform_indices = @transform_1, window_bounds = array<i64: 32, 128>}, {transform_indices = @transform_2, window_bounds = array<i64: 1, 128>}, {transform_indices = @transform_3, window_bounds = array<i64: 32, 384>}]} {
    %c0_i32 = arith.constant 0 : i32
    %0 = arith.cmpi eq, %arg1, %c0_i32 : i32
    %1 = arith.extui %0 : i1 to i32
    %c0_i32_0 = arith.constant 0 : i32
    %2 = arith.cmpi ne, %1, %c0_i32_0 : i32
    scf.if %2 {
      %cst_18 = arith.constant 0xFF800000 : f32
      %32 = vector.broadcast %cst_18 : f32 to vector<32x1xf32>
      %c0_19 = arith.constant 0 : index
      %c0_20 = arith.constant 0 : index
      %33 = vector.load %arg6[%c0_19, %c0_20] : memref<32x1xf32, #tpu.memory_space<vmem>>, vector<32x1xf32>
      tpu.vector_store %arg6[%c0_19, %c0_20], %32 {strides = array<i32>} : memref<32x1xf32, #tpu.memory_space<vmem>>, vector<32x1xf32>,
      %cst_21 = arith.constant 0.000000e+00 : f32
      %34 = vector.broadcast %cst_21 : f32 to vector<32x1xf32>
      %c0_22 = arith.constant 0 : index
      %c0_23 = arith.constant 0 : index
      %35 = vector.load %arg7[%c0_22, %c0_23] : memref<32x1xf32, #tpu.memory_space<vmem>>, vector<32x1xf32>
      tpu.vector_store %arg7[%c0_22, %c0_23], %34 {strides = array<i32>} : memref<32x1xf32, #tpu.memory_space<vmem>>, vector<32x1xf32>,
    } else {
    }
    %c0 = arith.constant 0 : index
    %c0_1 = arith.constant 0 : index
    %3 = vector.load %arg2[%c0, %c0_1] : memref<32x32xbf16, #tpu.memory_space<vmem>>, vector<32x32xbf16>
    %c0_2 = arith.constant 0 : index
    %c0_3 = arith.constant 0 : index
    %4 = vector.load %arg3[%c0_2, %c0_3] : memref<32x128xbf16, #tpu.memory_space<vmem>>, vector<32x128xbf16>
    %cst = arith.constant dense<0.000000e+00> : vector<32x128xf32>
    %5 = tpu.matmul %3, %4, %cst {dimension_numbers = #tpu.dot_dimension_numbers<[1], [0], [0], [1], [0, 0, 1, 1], [], []>} : vector<32x32xbf16>, vector<32x128xbf16>, vector<32x128xf32> -> vector<32x128xf32>
    %c0_4 = arith.constant 0 : index
    %c0_5 = arith.constant 0 : index
    %6 = vector.load %arg4[%c0_4, %c0_5] : memref<1x128xf32, #tpu.memory_space<vmem>>, vector<1x128xf32>
    %7 = vector.broadcast %6 : vector<1x128xf32> to vector<32x128xf32>
    %8 = arith.addf %5, %7 : vector<32x128xf32>
    %c128_i32 = arith.constant 128 : i32
    %9 = arith.muli %arg1, %c128_i32 : i32
    %10 = tpu.assume_multiple %9, 128 : i32
    %c0_6 = arith.constant 0 : index
    %11 = arith.index_cast %10 : i32 to index
    %12 = vector.load %arg5[%c0_6, %11] : memref<32x384xf32, #tpu.memory_space<vmem>>, vector<32x128xf32>
    tpu.vector_store %arg5[%c0_6, %11], %8 {strides = array<i32>} : memref<32x384xf32, #tpu.memory_space<vmem>>, vector<32x128xf32>,
    %c0_7 = arith.constant 0 : index
    %c0_8 = arith.constant 0 : index
    %13 = vector.load %arg6[%c0_7, %c0_8] : memref<32x1xf32, #tpu.memory_space<vmem>>, vector<32x1xf32>
    %cst_9 = arith.constant dense<0xFF800000> : vector<32xf32>
    %14 = vector.multi_reduction <maximumf>, %8, %cst_9 [1] : vector<32x128xf32> to vector<32xf32>
    %15 = vector.shape_cast %14 : vector<32xf32> to vector<32x1xf32>
    %16 = arith.maximumf %13, %15 : vector<32x1xf32>
    %17 = arith.subf %13, %16 : vector<32x1xf32>
    %18 = math.exp %17 : vector<32x1xf32>
    %c0_10 = arith.constant 0 : index
    %c0_11 = arith.constant 0 : index
    %19 = vector.load %arg7[%c0_10, %c0_11] : memref<32x1xf32, #tpu.memory_space<vmem>>, vector<32x1xf32>
    %20 = arith.mulf %18, %19 : vector<32x1xf32>
    %21 = vector.broadcast %16 : vector<32x1xf32> to vector<32x128xf32>
    %22 = arith.subf %8, %21 : vector<32x128xf32>
    %23 = math.exp %22 : vector<32x128xf32>
    %cst_12 = arith.constant dense<0.000000e+00> : vector<32xf32>
    %24 = vector.multi_reduction <add>, %23, %cst_12 [1] : vector<32x128xf32> to vector<32xf32>
    %25 = vector.shape_cast %24 : vector<32xf32> to vector<32x1xf32>
    %26 = arith.addf %20, %25 : vector<32x1xf32>
    %c0_13 = arith.constant 0 : index
    %c0_14 = arith.constant 0 : index
    %27 = vector.load %arg7[%c0_13, %c0_14] : memref<32x1xf32, #tpu.memory_space<vmem>>, vector<32x1xf32>
    tpu.vector_store %arg7[%c0_13, %c0_14], %26 {strides = array<i32>} : memref<32x1xf32, #tpu.memory_space<vmem>>, vector<32x1xf32>,
    %c0_15 = arith.constant 0 : index
    %c0_16 = arith.constant 0 : index
    %28 = vector.load %arg6[%c0_15, %c0_16] : memref<32x1xf32, #tpu.memory_space<vmem>>, vector<32x1xf32>
    tpu.vector_store %arg6[%c0_15, %c0_16], %16 {strides = array<i32>} : memref<32x1xf32, #tpu.memory_space<vmem>>, vector<32x1xf32>,
    %c2_i32 = arith.constant 2 : i32
    %29 = arith.cmpi eq, %arg1, %c2_i32 : i32
    %30 = arith.extui %29 : i1 to i32
    %c0_i32_17 = arith.constant 0 : i32
    %31 = arith.cmpi ne, %30, %c0_i32_17 : i32
    scf.if %31 {
      %c0_18 = arith.constant 0 : index
      %c0_19 = arith.constant 0 : index
      %32 = vector.load %arg6[%c0_18, %c0_19] : memref<32x1xf32, #tpu.memory_space<vmem>>, vector<32x1xf32>
      %c0_20 = arith.constant 0 : index
      %c0_21 = arith.constant 0 : index
      %33 = vector.load %arg7[%c0_20, %c0_21] : memref<32x1xf32, #tpu.memory_space<vmem>>, vector<32x1xf32>
      %34 = math.log %33 : vector<32x1xf32>
      %35 = arith.addf %32, %34 : vector<32x1xf32>
      %c0_22 = arith.constant 0 : index
      %c0_23 = arith.constant 0 : index
      %36 = vector.load %arg5[%c0_22, %c0_23] : memref<32x384xf32, #tpu.memory_space<vmem>>, vector<32x384xf32>
      %37 = vector.broadcast %35 : vector<32x1xf32> to vector<32x384xf32>
      %38 = arith.subf %36, %37 : vector<32x384xf32>
      %c0_24 = arith.constant 0 : index
      %c0_25 = arith.constant 0 : index
      %39 = vector.load %arg5[%c0_24, %c0_25] : memref<32x384xf32, #tpu.memory_space<vmem>>, vector<32x384xf32>
      tpu.vector_store %arg5[%c0_24, %c0_25], %38 {strides = array<i32>} : memref<32x384xf32, #tpu.memory_space<vmem>>, vector<32x384xf32>,
    } else {
    }
    return
  }
  func.func @transform_0(%arg0: i32, %arg1: i32) -> (i32, i32) {
    %c0_i32 = arith.constant 0 : i32
    %c0_i32_0 = arith.constant 0 : i32
    return %arg0, %c0_i32 : i32, i32
  }
  func.func @transform_1(%arg0: i32, %arg1: i32) -> (i32, i32) {
    %c0_i32 = arith.constant 0 : i32
    %c0_i32_0 = arith.constant 0 : i32
    return %c0_i32, %arg1 : i32, i32
  }
  func.func @transform_2(%arg0: i32, %arg1: i32) -> (i32, i32) {
    %c0_i32 = arith.constant 0 : i32
    %c0_i32_0 = arith.constant 0 : i32
    return %c0_i32, %arg1 : i32, i32
  }
  func.func @transform_3(%arg0: i32, %arg1: i32) -> (i32, i32) {
    %c0_i32 = arith.constant 0 : i32
    %c0_i32_0 = arith.constant 0 : i32
    return %arg0, %c0_i32 : i32, i32
  }
}

</mosaic_0001>

<bundles_post_ra>
// kernel: projection_layer.1
= control target key start
LH: loop header
LB: loop body
LE: loop exit
PB: predicated region body
PF: predicated region fallthrough
CT: control target
= control target key end

     0   :  { %s841_s12 = smov 0   ;;  %s843_s13 = smov 0   ;;  %s984_s0 = inlined_call_operand.vmem [shape: bf16[64,32], index: 0, kind: input, shape index: {}]   ;;  %s985_s1 = inlined_call_operand.vmem [shape: bf16[32,384], index: 1, kind: input, shape index: {}]   ;;  %s986_s2 = inlined_call_operand.vmem [shape: f32[1,384], index: 2, kind: input, shape index: {}]   ;;  %s987_s3 = inlined_call_operand.vmem [shape: f32[64,384], index: 3, kind: output, shape index: {}]  }
   0x1   :  { %s845_s14 = smov 0   ;;  %s847_s15 = smov 0  }
   0x2   :  { %s849_s16 = smov 0   ;;  %s851_s17 = smov 0  }
   0x3   :  { %s853_s18 = smov 0  }
   0x4 LB: > { %s22_s19 = sadd.s32 1, %s807_s16  ;;  %s25_s20 = sadd.s32 1, %s811_s17  ;;  %s815_s18 = sphi %s853_s18, %s13_s18   ;;  %s811_s17 = sphi %s851_s17, %s993_s17   ;;  %s807_s16 = sphi %s849_s16, %s992_s16   ;;  %s803_s15 = sphi %s847_s15, %s991_s15   ;;  %s799_s14 = sphi %s845_s14, %s990_s14   ;;  %s795_s13 = sphi %s843_s13, %s989_s13   ;;  %s791_s12 = sphi %s841_s12, %s988_s12  }
   0x5   : > { %p23_p0 = scmp.ge.s32.totalorder %s22_s19, 3  ;;  %s58_s21 = sadd.s32 1, %s795_s13 }
   0x6   : > { %p65_p1 = scmp.ne.s32.totalorder %s795_s13, %s791_s12  ;;  %p66_p2 = scmp.eq.s32.totalorder %s815_s18, 0 }
   0x7   : > { %s995_s19 = smov (%p23_p0, %s22_s19), 0  ;;  %s997_s20 = smov (!%p23_p0, %s25_s20), %s811_s17 }
   0x8   : > { %s55_s22 = ssub.s32 %s807_s16, %s995_s19  ;;  %p67_p3 = por %p66_p2, %p65_p1 }
   0x9   : > { %p27_p4 = scmp.ge.s32.totalorder %s997_s20, 2  ;;  %p56_p5 = scmp.eq.s32.totalorder %s55_s22, 0 }
   0xa   : > { %p631_p6 = scmp.ge.s32.totalorder %s815_s18, 6 }
   0xb   : > { %s999_s20 = smov (%p27_p4, %s997_s20), 0 }
   0xc   : > { %s890_s23 = scalar_select %p56_p5, %s795_s13, %s58_s21  }
   0xd   : > { %143 = sbr.rel (%p631_p6) target bundleno = 26 (0x1a), region = 16 }
  0x12   : > { %155 = sbr.rel (!%p67_p3) target bundleno = 26 (0x1a), region = 24  ;;  %s157_s24 = sand.u32 (%p67_p3), 1, %s795_s13  }
  0x13   : > { %s633_s25 = sshll.u32 (%p67_p3), %s807_s16, 2  ;;  %s632_s26 = sshll.u32 (%p67_p3), %s157_s24, 4 }
  0x14   : > { %s161_s29 = scalar_lea.vmem (%p67_p3), %s985_s1, %s633_s25  ;;  %s159_s30 = scalar_lea.vmem (%p67_p3), [#allocation4], %s632_s26 }
  0x15   : > { %v178_v0 = vld [vmem:[%s161_s29] sm:$0xf] (%p67_p3)  ;;  %v180_v1 = vld [vmem:[%s161_s29 + $0xc] sm:$0xf] (%p67_p3)  ;;  %v182_v2 = vld [vmem:[%s161_s29 + $0x18] sm:$0xf] (%p67_p3) }
  0x16   : > { %179 = vst [vmem:[%s159_s30] sm:$0xf] (%p67_p3), %v178_v0  ;;  %v184_v3 = vld [vmem:[%s161_s29 + $0x24] sm:$0xf] (%p67_p3) }
  0x17   : > { %181 = vst [vmem:[%s159_s30 + $0x4] sm:$0xf] %v180_v1 }
  0x18   : > { %183 = vst [vmem:[%s159_s30 + $0x8] sm:$0xf] %v182_v2 }
  0x19   : > { %185 = vst [vmem:[%s159_s30 + $0xc] sm:$0xf] %v184_v3 }
  0x1a PF: > { %p634_p7 = scmp.ge.s32.totalorder %s815_s18, 1  ;;  %p222_p8 = scmp.lt.s32.totalorder %s815_s18, 7 }
  0x1c   : > { %p223_p9 = pnand %p634_p7, %p222_p8 }
  0x1d   : > { %s229_s4 = sand.u32 (!%p223_p9), 1, %s791_s12   ;;  %s636_s5 = sshll.u32 (!%p223_p9), %s803_s15, 2 }
  0x1e   : > { %226 = sbr.rel (%p223_p9) target bundleno = 699 (0x2bb), region = 69  ;;  %s635_s6 = sshll.u32 (!%p223_p9), %s229_s4, 4 }
  0x1f   : > { %p262_p10 = scmp.lt.s32.totalorder (!%p223_p9), %s636_s5, 7  ;;  %p267_p11 = scmp.lt.s32.totalorder (!%p223_p9), %s799_s14, 2 }
  0x20   : > { %s231_s27 = scalar_lea.vmem (!%p223_p9), [#allocation4], %s635_s6  ;;  %p640_p12 = scmp.ne.s32.totalorder (!%p223_p9), %s799_s14, 0 }
  0x23   : > { %s1001_s5 = smov (!%p262_p10, %s636_s5), 7  ;;  %281 = sbr.rel (%p640_p12) target bundleno = 49 (0x31), region = 77 }
  0x24   : > { %s904_s7 = scalar_select %p267_p11, %s799_s14, 2 }
  0x25   : > { %s637_s8 = sshll.u32 %s1001_s5, 2  ;;  %s670_s9 = smul.u32 24, %s1001_s5 }
  0x26   : > { %s265_s21 = scalar_lea.vmem %s984_s0, %s637_s8  ;;  %s269_s25 = scalar_lea.vmem %s986_s2, %s904_s7 }
  0x27   : > { %s916_s15 = scalar_lea.vmem %s987_s3, %s670_s9 }
  0x28   : > { %vm282_vm0 = vcmask 7168   ;;  %v817_v4 = vmov -inf   ;;  %v818_v5 = vmov 0.0  }
  0x29   : > { %283 = vst.msk [vmem:[#allocation2] sm:$0xff] %vm282_vm0, %v817_v4 }
  0x2a   : > { %284 = vst.msk [vmem:[#allocation2 + $0x8] sm:$0xff] %vm282_vm0, %v817_v4 }
  0x2b   : > { %285 = vst.msk [vmem:[#allocation2 + $0x10] sm:$0xff] %vm282_vm0, %v817_v4 }
  0x2c   : > { %286 = vst.msk [vmem:[#allocation2 + $0x18] sm:$0xff] %vm282_vm0, %v817_v4 }
  0x2d   : > { %287 = vst.msk [vmem:[#allocation3] sm:$0xff] %vm282_vm0, %v818_v5 }
  0x2e   : > { %288 = vst.msk [vmem:[#allocation3 + $0x8] sm:$0xff] %vm282_vm0, %v818_v5 }
  0x2f   : > { %289 = vst.msk [vmem:[#allocation3 + $0x10] sm:$0xff] %vm282_vm0, %v818_v5 }
  0x30   : > { %290 = vst.msk [vmem:[#allocation3 + $0x18] sm:$0xff] %vm282_vm0, %v818_v5 }
  0x31 PF: > { %v667_v6 = vld [vmem:[%s231_s27 + $0x8] sm:$0xff]  ;;  %v666_v7 = vld [vmem:[%s231_s27] sm:$0xff]  ;;  %vm325_vm1 = vcmask 261120   ;;  %s659_s28 = sshll.u32 %s799_s14, 7  ;;  %v819_v19 = vmov 0   ;;  %vm440_vm2 = vcmask 7168  }
  0x32   : > { %338 = vmatpush.bf16.msra.mxu0 %v667_v6  ;;  %668 = vmatpush.bf16.msra.mxu1 %v667_v6  ;;  %v664_v8 = vld [vmem:[%s265_s21] sm:$0xff]  ;;  %v665_v9 = vld [vmem:[%s265_s21 + $0x8] sm:$0xff]  ;;  %s352_s29 = sshra.s32 %s659_s28, 7  ;;  %v926_v20 = vld [vmem:[#allocation2 + $0x10] sm:$0xff]  ;;  %p661_p13 = scmp.ne.s32.totalorder %s799_s14, 2 }
  0x33   : > { %v734_v10 = vld [vmem:[%s269_s25] ss:$0 sm:$0xff]  ;;  %s660_s5 = sshll.u32 %s352_s29, 3  ;;  %732 = vset.pattern.permute.xlu0 %v819_v19  ;;  %731 = vset.pattern.permute.xlu2 %v819_v19  ;;  %v363_v28 = vld [vmem:[#allocation2 + $0x18] sm:$0xff]  ;;  %v361_v29 = vld [vmem:[#allocation2 + $0x8] sm:$0xff] }
  0x34   : > { %s355_s6 = scalar_lea.vmem %s916_s15, %s660_s5  ;;  %733 = vset.pattern.permute.xlu1 %v819_v19  ;;  %v360_v21 = vld [vmem:[#allocation2] sm:$0xff] }
  0x35   : > { %v388_v55 = vld [vmem:[#allocation3] sm:$0xff]  ;;  %v389_v60 = vld [vmem:[#allocation3 + $0x8] sm:$0xff] }
  0x36   : > { %339 = vmatpush.bf16.msra.mxu0 %v666_v7  ;;  %669 = vmatpush.bf16.msra.mxu1 %v666_v7  ;;  %v390_v3 = vld [vmem:[#allocation3 + $0x10] sm:$0xff] }
  0x39   : > { %657 = vmatmul.msk.bf16.vlgmr.msra.gmra.mxu0 %vm325_vm1, %v664_v8  ;;  %658 = vmatmul.msk.bf16.vlgmr.msra.gmra.mxu1 %vm325_vm1, %v665_v9  ;;  %v391_v8 = vld [vmem:[#allocation3 + $0x18] sm:$0xff] }
  0xb6   : > { %v341_v11 = vpop.f32.mrf.mxu0  ;;  %v346_v12 = vpop.f32.mrf.mxu1 }
  0xb7   : > { %v342_v13 = vadd.f32 %v734_v10, %v341_v11  ;;  %v347_v14 = vadd.f32 %v734_v10, %v346_v12 }
  0xb9   : > { %356 = vst [vmem:[%s355_s6] sm:$0xff] %v342_v13  ;;  %368 = vmax.xlane.f32.xlu1 %v347_v14  ;;  %364 = vmax.xlane.f32.xlu0 %v342_v13 }
  0xba   : > { %358 = vst [vmem:[%s355_s6 + $0x30] sm:$0xff] %v347_v14 }
  0xbe   : > { %v343_v15 = vpop.f32.mrf.mxu0  ;;  %v348_v16 = vpop.f32.mrf.mxu1 }
  0xbf   : > { %v344_v17 = vadd.f32 %v734_v10, %v343_v15  ;;  %v349_v18 = vadd.f32 %v734_v10, %v348_v16 }
  0xc1   : > { %357 = vst [vmem:[%s355_s6 + $0x18] sm:$0xff] %v344_v17  ;;  %370 = vmax.xlane.f32.xlu1 %v349_v18  ;;  %366 = vmax.xlane.f32.xlu0 %v344_v17 }
  0xc2   : > { %359 = vst [vmem:[%s355_s6 + $0x48] sm:$0xff] %v349_v18 }
 0x12c   : > { %v369_v22 = vpop.xlane.xlu1 %368  ;;  %v365_v23 = vpop.xlane.xlu0 %364 }
 0x12d   : > { %v374_v24 = vmax.f32 %v926_v20, %v369_v22  ;;  %v372_v25 = vmax.f32 %v360_v21, %v365_v23 }
 0x12f   : > { %v378_v26 = vsub.f32 %v926_v20, %v374_v24  ;;  %447 = vst.msk [vmem:[#allocation2 + $0x10] sm:$0xff] %vm440_vm2, %v374_v24  ;;  %v376_v27 = vsub.f32 %v360_v21, %v372_v25  ;;  %408 = vperm.xlu0 %732, %v374_v24   ;;  %398 = vperm.xlu2 %731, %v372_v25  }
 0x130   : > { %445 = vst.msk [vmem:[#allocation2] sm:$0xff] %vm440_vm2, %v372_v25 }
 0x131   : > { %v380_v52 = vmul.f32 1.442695, %v376_v27  ;;  %v384_v0 = vmul.f32 1.442695, %v378_v26 }
 0x134   : > { %v371_v30 = vpop.xlane.xlu1 %370  ;;  %v367_v31 = vpop.xlane.xlu0 %366 }
 0x135   : > { %v375_v32 = vmax.f32 %v363_v28, %v371_v30  ;;  %v373_v33 = vmax.f32 %v361_v29, %v367_v31 }
 0x137   : > { %v379_v34 = vsub.f32 %v363_v28, %v375_v32  ;;  %448 = vst.msk [vmem:[#allocation2 + $0x18] sm:$0xff] %vm440_vm2, %v375_v32  ;;  %v377_v35 = vsub.f32 %v361_v29, %v373_v33  ;;  %413 = vperm.xlu1 %733, %v375_v32   ;;  %403 = vperm.xlu2 %731, %v373_v33  }
 0x138   : > { %446 = vst.msk [vmem:[#allocation2 + $0x8] sm:$0xff] %vm440_vm2, %v373_v33 }
 0x139   : > { %v382_v53 = vmul.f32 1.442695, %v377_v35  ;;  %v386_v1 = vmul.f32 1.442695, %v379_v34 }
 0x189   : > { %v399_v36 = vpop.permute.xlu2 %398 }
 0x18a   : > { %v416_v37 = vsub.f32 %v342_v13, %v399_v36 }
 0x18c   : > { %v420_v38 = vmul.f32 1.442695, %v416_v37 }
 0x18e   : > { %735 = vpow2.f32 %v420_v38 }
 0x191   : > { %v404_v39 = vpop.permute.xlu2 %403 }
 0x192   : > { %v417_v40 = vsub.f32 %v344_v17, %v404_v39 }
 0x194   : > { %v736_v41 = vpop.eup %735  ;;  %v422_v42 = vmul.f32 1.442695, %v417_v40 }
 0x195   : > { %428 = vadd.xlane.f32.xlu2 %v736_v41 }
 0x196   : > { %737 = vpow2.f32 %v422_v42 }
 0x19c   : > { %v738_v43 = vpop.eup %737 }
 0x19d   : > { %430 = vadd.xlane.f32.xlu1 %v738_v43 }
 0x1a1   : > { %v409_v44 = vpop.permute.xlu0 %408 }
 0x1a2   : > { %v418_v45 = vsub.f32 %v347_v14, %v409_v44 }
 0x1a4   : > { %v424_v46 = vmul.f32 1.442695, %v418_v45 }
 0x1a6   : > { %739 = vpow2.f32 %v424_v46 }
 0x1a9   : > { %v414_v47 = vpop.permute.xlu1 %413 }
 0x1aa   : > { %v419_v48 = vsub.f32 %v349_v18, %v414_v47 }
 0x1ac   : > { %v740_v49 = vpop.eup %739  ;;  %v426_v50 = vmul.f32 1.442695, %v419_v48 }
 0x1ad   : > { %432 = vadd.xlane.f32.xlu0 %v740_v49 }
 0x1ae   : > { %741 = vpow2.f32 %v426_v50 }
 0x1af   : > { %743 = vpow2.f32 %v380_v52 }
 0x1b0   : > { %745 = vpow2.f32 %v382_v53 }
 0x1b1   : > { %747 = vpow2.f32 %v384_v0 }
 0x1b2   : > { %749 = vpow2.f32 %v386_v1 }
 0x1b4   : > { %v742_v51 = vpop.eup %741 }
 0x1b5   : > { %434 = vadd.xlane.f32.xlu2 %v742_v51  ;;  %v744_v54 = vpop.eup %743 }
 0x1b6   : > { %v392_v56 = vmul.f32 %v744_v54, %v388_v55  ;;  %v746_v59 = vpop.eup %745 }
 0x1b7   : > { %v393_v61 = vmul.f32 %v746_v59, %v389_v60  ;;  %v748_v2 = vpop.eup %747 }
 0x1b8   : > { %v394_v4 = vmul.f32 %v748_v2, %v390_v3  ;;  %v750_v7 = vpop.eup %749 }
 0x1b9   : > { %v395_v9 = vmul.f32 %v750_v7, %v391_v8 }
 0x208   : > { %v429_v57 = vpop.xlane.xlu2 %428 }
 0x209   : > { %v436_v58 = vadd.f32 %v429_v57, %v392_v56 }
 0x20b   : > { %441 = vst.msk [vmem:[#allocation3] sm:$0xff] %vm440_vm2, %v436_v58 }
 0x210   : > { %v431_v62 = vpop.xlane.xlu1 %430 }
 0x211   : > { %v437_v63 = vadd.f32 %v431_v62, %v393_v61 }
 0x213   : > { %442 = vst.msk [vmem:[#allocation3 + $0x8] sm:$0xff] %vm440_vm2, %v437_v63 }
 0x220   : > { %v433_v5 = vpop.xlane.xlu0 %432 }
 0x221   : > { %v438_v6 = vadd.f32 %v433_v5, %v394_v4 }
 0x223   : > { %443 = vst.msk [vmem:[#allocation3 + $0x10] sm:$0xff] %vm440_vm2, %v438_v6 }
 0x227   : > { %452 = sbr.rel (%p661_p13) target bundleno = 699 (0x2bb), region = 81 }
 0x228   : > { %v435_v10 = vpop.xlane.xlu2 %434 }
 0x229   : > { %v439_v11 = vadd.f32 %v435_v10, %v395_v9 }
 0x22b   : > { %444 = vst.msk [vmem:[#allocation3 + $0x18] sm:$0xff] %vm440_vm2, %v439_v11 }
 0x22c   : > { %v459_v12 = vld [vmem:[#allocation3 + $0x10] sm:$0xff]  ;;  %v820_v13 = vmov 0   ;;  %v457_v14 = vld [vmem:[#allocation3] sm:$0xff]  ;;  %v458_v16 = vld [vmem:[#allocation3 + $0x8] sm:$0xff] }
 0x22d   : > { %752 = vset.pattern.permute.xlu1 %v820_v13  ;;  %751 = vset.pattern.permute.xlu0 %v820_v13  ;;  %753 = vlog2.f32 %v459_v12  ;;  %v455_v18 = vld [vmem:[#allocation2 + $0x10] sm:$0xff]  ;;  %v453_v21 = vld [vmem:[#allocation2] sm:$0xff]  ;;  %v456_v28 = vld [vmem:[#allocation2 + $0x18] sm:$0xff] }
 0x22e   : > { %755 = vlog2.f32 %v457_v14  ;;  %v454_v30 = vld [vmem:[#allocation2 + $0x8] sm:$0xff]  ;;  %v473_v33 = vld [vmem:[%s916_s15] sm:$0xff]  ;;  %v475_v35 = vld [vmem:[%s916_s15 + $0x10] sm:$0xff] }
 0x22f   : > { %v474_v34 = vld [vmem:[%s916_s15 + $0x8] sm:$0xff]  ;;  %v479_v36 = vld [vmem:[%s916_s15 + $0x30] sm:$0xff]  ;;  %v476_v39 = vld [vmem:[%s916_s15 + $0x18] sm:$0xff] }
 0x230   : > { %v482_v38 = vld [vmem:[%s916_s15 + $0x48] sm:$0xff]  ;;  %v480_v40 = vld [vmem:[%s916_s15 + $0x38] sm:$0xff]  ;;  %v483_v44 = vld [vmem:[%s916_s15 + $0x50] sm:$0xff] }
 0x231   : > { %v477_v45 = vld [vmem:[%s916_s15 + $0x20] sm:$0xff]  ;;  %v484_v48 = vld [vmem:[%s916_s15 + $0x58] sm:$0xff]  ;;  %v478_v49 = vld [vmem:[%s916_s15 + $0x28] sm:$0xff] }
 0x232   : > { %v460_v15 = vld [vmem:[#allocation3 + $0x18] sm:$0xff]  ;;  %v481_v46 = vld [vmem:[%s916_s15 + $0x40] sm:$0xff] }
 0x233   : > { %757 = vlog2.f32 %v460_v15  ;;  %v754_v17 = vpop.eup %753 }
 0x234   : > { %759 = vlog2.f32 %v458_v16  ;;  %v756_v19 = vpop.eup %755  ;;  %v466_v20 = vmul.f32 0.6931472, %v754_v17 }
 0x235   : > { %v462_v23 = vmul.f32 0.6931472, %v756_v19 }
 0x236   : > { %v471_v25 = vadd.f32 %v466_v20, %v455_v18 }
 0x237   : > { %v469_v26 = vadd.f32 %v462_v23, %v453_v21 }
 0x238   : > { %497 = vperm.xlu1 %752, %v471_v25  }
 0x239   : > { %v758_v22 = vpop.eup %757  ;;  %487 = vperm.xlu0 %751, %v469_v26  }
 0x23a   : > { %v760_v24 = vpop.eup %759  ;;  %v468_v27 = vmul.f32 0.6931472, %v758_v22 }
 0x23b   : > { %v464_v29 = vmul.f32 0.6931472, %v760_v24 }
 0x23c   : > { %v472_v31 = vadd.f32 %v468_v27, %v456_v28 }
 0x23d   : > { %v470_v32 = vadd.f32 %v464_v29, %v454_v30 }
 0x240   : > { %502 = vperm.xlu1 %752, %v472_v31  }
 0x241   : > { %492 = vperm.xlu0 %751, %v470_v32  }
 0x2aa   : > { %v498_v47 = vpop.permute.xlu1 %497 }
 0x2ab   : > { %v488_v37 = vpop.permute.xlu0 %487  ;;  %v511_v54 = vsub.f32 %v479_v36, %v498_v47  ;;  %v512_v56 = vsub.f32 %v480_v40, %v498_v47  ;;  %v513_v57 = vsub.f32 %v481_v46, %v498_v47 }
 0x2ac   : > { %v505_v41 = vsub.f32 %v473_v33, %v488_v37  ;;  %v506_v42 = vsub.f32 %v474_v34, %v488_v37  ;;  %v507_v43 = vsub.f32 %v475_v35, %v488_v37 }
 0x2ad   : > { %523 = vst [vmem:[%s916_s15 + $0x30] sm:$0xff] %v511_v54 }
 0x2ae   : > { %517 = vst [vmem:[%s916_s15] sm:$0xff] %v505_v41 }
 0x2af   : > { %518 = vst [vmem:[%s916_s15 + $0x8] sm:$0xff] %v506_v42 }
 0x2b0   : > { %519 = vst [vmem:[%s916_s15 + $0x10] sm:$0xff] %v507_v43 }
 0x2b1   : > { %524 = vst [vmem:[%s916_s15 + $0x38] sm:$0xff] %v512_v56 }
 0x2b2   : > { %v503_v55 = vpop.permute.xlu1 %502  ;;  %525 = vst [vmem:[%s916_s15 + $0x40] sm:$0xff] %v513_v57 }
 0x2b3   : > { %v493_v50 = vpop.permute.xlu0 %492  ;;  %v514_v58 = vsub.f32 %v482_v38, %v503_v55  ;;  %v515_v59 = vsub.f32 %v483_v44, %v503_v55  ;;  %v516_v60 = vsub.f32 %v484_v48, %v503_v55 }
 0x2b4   : > { %v508_v51 = vsub.f32 %v476_v39, %v493_v50  ;;  %v509_v52 = vsub.f32 %v477_v45, %v493_v50  ;;  %v510_v53 = vsub.f32 %v478_v49, %v493_v50 }
 0x2b5   : > { %526 = vst [vmem:[%s916_s15 + $0x48] sm:$0xff] %v514_v58 }
 0x2b6   : > { %520 = vst [vmem:[%s916_s15 + $0x18] sm:$0xff] %v508_v51 }
 0x2b7   : > { %521 = vst [vmem:[%s916_s15 + $0x20] sm:$0xff] %v509_v52 }
 0x2b8   : > { %522 = vst [vmem:[%s916_s15 + $0x28] sm:$0xff] %v510_v53 }
 0x2b9   : > { %527 = vst [vmem:[%s916_s15 + $0x50] sm:$0xff] %v515_v59 }
 0x2ba   : > { %528 = vst [vmem:[%s916_s15 + $0x58] sm:$0xff] %v516_v60 }
 0x2bb PF: > { %s13_s18 = sadd.s32 1, %s815_s18   ;;  %s988_s12 = smov %s795_s13 }
 0x2bc   : > { %p10_p0 = scmp.ge.s32.totalorder %s13_s18, 8   ;;  %s989_s13 = smov %s890_s23 }
 0x2bd   : > { %s990_s14 = smov %s807_s16  ;;  %s991_s15 = smov %s811_s17 }
 0x2be   : > { %s992_s16 = smov %s995_s19  ;;  %s993_s17 = smov %s999_s20 }
 0x2bf   :  { %12 = sbr.rel (!%p10_p0) target bundleno = 4 (0x4), region = 123 }

</bundles_post_ra>
